<compile_context>
chip_gen: v5e
topology: v5e:2x2
jax: 0.10.0
libtpu: 0.0.40
codegen_flags: <defaults>
</compile_context>

<pallas_src>
import jax
import jax.numpy as jnp
from jax.experimental import pallas as pl
from jax.experimental.pallas import tpu as pltpu

HIDDEN = 64  # logical hidden width of nn.Linear(., 64)


def _round_up(x, m):
    return ((x + m - 1) // m) * m


def _feature_aux_kernel(feat_ref, act_ref, wb1_ref, wb2_ref, o_ref):
    """Fused squeeze(0) + [:-1] + concat + Linear(.,64) + ReLU + Linear(64,.).

    feat_ref: (1, T_blk, F)    act_ref: (T_blk, A)
    wb1_ref : (Fp+Ap+1, H)     rows [0,F)=W1_feat, [Fp,Fp+A)=W1_act,
                               row Fp+Ap = b1  (zero rows elsewhere)
    wb2_ref : (H+1, Dp)        rows [0,H)=W2 (cols >= D_out are zero),
                               row H = b2
    o_ref   : (rows, Dp)       Dp is a multiple of 128 -> lane-dense store
    """
    rows = o_ref.shape[0]
    F = feat_ref.shape[-1]
    A = act_ref.shape[-1]
    Fp = _round_up(F, 8)
    Ap = _round_up(A, 8)
    H = wb1_ref.shape[-1]

    # squeeze(0) + drop the last timestep: static slices starting at row 0
    # (sublane-aligned, no VMEM re-layout).  In the gridded path the block
    # already has exactly `rows` rows, so these are full-view loads.
    feat = feat_ref[0, :rows, :]                         # (rows, F)
    act = act_ref[:rows, :]                              # (rows, A)

    # Statically (8-)aligned slices of the packed weight slab.
    w1f = wb1_ref[:F, :]                                 # (F, H)
    w1a = wb1_ref[Fp:Fp + A, :]                          # (A, H)
    b1 = wb1_ref[Fp + Ap:Fp + Ap + 1, :]                 # (1, H)

    # concat(feature, action) @ W1 == feature @ W1_feat + action @ W1_act
    h = jnp.dot(feat, w1f, preferred_element_type=jnp.float32)
    h = h + jnp.dot(act, w1a, preferred_element_type=jnp.float32)
    h = jnp.maximum(h + b1, 0.0)                         # (rows, H)

    w2 = wb2_ref[:H, :]                                  # (H, Dp)
    b2 = wb2_ref[H:H + 1, :]                             # (1, Dp)
    o = jnp.dot(h, w2, preferred_element_type=jnp.float32) + b2
    o_ref[...] = o.astype(o_ref.dtype)                   # lane-dense store


def feature_auxiliary_forward(feature, action, params, *,
                              row_tile=256, gridless_max_rows=512):
    """feature: (1, T, F) f32, action: (T, A) f32 -> (T-1, D_out) f32."""
    wb1, wb2 = params["wb1"], params["wb2"]
    d_out = params["out_dim"]            # python int (static)
    _, T, F = feature.shape
    A = action.shape[-1]
    H = wb1.shape[-1]
    Dp = wb2.shape[-1]
    B = T - 1

    # Honest (logical, unpadded) cost hint for XLA's scheduler.
    flops = 2 * B * (F * H + A * H + H * d_out)
    bytes_accessed = 4 * (B * (F + A + d_out) + (F + A + 1) * H
                          + (H + 1) * d_out)
    cost = pl.CostEstimate(flops=int(flops), transcendentals=0,
                           bytes_accessed=int(bytes_accessed))
    vmem = pltpu.MemorySpace.VMEM

    if B <= gridless_max_rows:
        # Latency path: one gridless call, whole operands resident in VMEM
        # (~tens of KB), no pipeline prologue/epilogue.
        out = pl.pallas_call(
            _feature_aux_kernel,
            out_shape=jax.ShapeDtypeStruct((B, Dp), jnp.float32),
            in_specs=[pl.BlockSpec(memory_space=vmem)] * 4,
            out_specs=pl.BlockSpec(memory_space=vmem),
            cost_estimate=cost,
        )(feature, action, wb1, wb2)
        return out[:, :d_out]

    # Throughput path: grid over row tiles of the (T-1) batch dimension so the
    # matmul M-dim fills the MXU and fixed per-call costs are amortized.
    tm = int(row_tile)
    nb = pl.cdiv(B, tm)
    bp = nb * tm
    pad = max(0, bp - T)   # rows needed so every input block read is in-bounds
    if pad > 0:
        feature = jnp.pad(feature, ((0, 0), (0, pad), (0, 0)))
        action = jnp.pad(action, ((0, pad), (0, 0)))

    out = pl.pallas_call(
        _feature_aux_kernel,
        out_shape=jax.ShapeDtypeStruct((bp, Dp), jnp.float32),
        grid=(nb,),
        in_specs=[
            pl.BlockSpec((1, tm, F), lambda i: (0, i, 0)),
            pl.BlockSpec((tm, A), lambda i: (i, 0)),
            # Constant index_map -> weights fetched once, VMEM-resident.
            pl.BlockSpec(wb1.shape, lambda i: (0, 0)),
            pl.BlockSpec(wb2.shape, lambda i: (0, 0)),
        ],
        out_specs=pl.BlockSpec((tm, Dp), lambda i: (i, 0)),
        compiler_params=pltpu.CompilerParams(
            dimension_semantics=("parallel",)),
        cost_estimate=cost,
    )(feature, action, wb1, wb2)
    return out[:B, :d_out]


def init_params(key, feature_dim, action_dim, output_dim, hidden=HIDDEN):
    """Kaiming-normal (gain=sqrt(2), fan_in) weights, zero biases — matches
    nn.init.kaiming_normal_(w, calculate_gain('relu')) + constant_(b, 0).

    Packed TPU layout (fewer DMA operands, logical hidden width, lane-dense
    output columns):
      wb1 (Fp+Ap+1, hidden): rows [0,F)=W1_feat, rows [Fp,Fp+A)=W1_act,
                             row Fp+Ap = b1, zero rows elsewhere.
      wb2 (hidden+1, Dp)   : rows [0,hidden)=W2, columns zero-padded from
                             output_dim to Dp = round_up(output_dim, 128);
                             row hidden = b2.
    The zero padding is mathematically exact (padded lanes are sliced off by
    the wrapper), so the forward equals the 64-hidden, D_out-wide MLP.
    """
    input_dim = feature_dim + action_dim
    k1, k2 = jax.random.split(key)
    std1 = (2.0 / input_dim) ** 0.5
    std2 = (2.0 / hidden) ** 0.5
    # Stored as (in, out) so the kernel computes x @ W (== x @ W_pt.T).
    w1 = jax.random.normal(k1, (input_dim, hidden), jnp.float32) * std1
    w2 = jax.random.normal(k2, (hidden, output_dim), jnp.float32) * std2

    fp = _round_up(feature_dim, 8)
    ap = _round_up(action_dim, 8)
    dp = _round_up(output_dim, 128)

    wb1 = jnp.zeros((fp + ap + 1, hidden), jnp.float32)
    wb1 = wb1.at[:feature_dim].set(w1[:feature_dim])
    wb1 = wb1.at[fp:fp + action_dim].set(w1[feature_dim:])
    # b1 == 0: row fp+ap is already zero.

    wb2 = jnp.zeros((hidden + 1, dp), jnp.float32)
    wb2 = wb2.at[:hidden, :output_dim].set(w2)
    # b2 == 0: row `hidden` is already zero.

    # NOTE: "out_dim" is a static python int; keep it out of traced args if
    # you jit this wrapper (or mark params static / pass out_dim separately).
    return {"wb1": wb1, "wb2": wb2, "out_dim": output_dim}


if __name__ == "__main__":
    # Small shapes consistent with the module: feature_dim=24, action_dim=8
    # (input_dim=32), output_dim (next-feature dim)=32.
    FEATURE_DIM = 24
    ACTION_DIM = 8
    OUTPUT_DIM = 32

    key = jax.random.PRNGKey(0)
    k_feat, k_act, k_param, k_feat2, k_act2 = jax.random.split(key, 5)
    params = init_params(k_param, FEATURE_DIM, ACTION_DIM, OUTPUT_DIM)

    def reference(feature, action):
        # Plain-JAX forward using the same packed params (padding is exact).
        fp = _round_up(FEATURE_DIM, 8)
        ap = _round_up(ACTION_DIM, 8)
        wb1, wb2 = params["wb1"], params["wb2"]
        w1f, w1a, b1 = wb1[:FEATURE_DIM], wb1[fp:fp + ACTION_DIM], wb1[fp + ap]
        w2, b2 = wb2[:HIDDEN, :OUTPUT_DIM], wb2[HIDDEN, :OUTPUT_DIM]
        xf, xa = feature[0, :-1], action[:-1]
        h = jnp.maximum(xf @ w1f + xa @ w1a + b1, 0.0)
        return h @ w2 + b2

    # 1) Single short trajectory (T=9 -> B=8): gridless latency path.
    T = 9
    feature = jax.random.normal(k_feat, (1, T, FEATURE_DIM), jnp.float32)
    action = jax.random.normal(k_act, (T, ACTION_DIM), jnp.float32)
    out = jax.block_until_ready(
        feature_auxiliary_forward(feature, action, params))
    ref = reference(feature, action)
    assert out.shape == (T - 1, OUTPUT_DIM)
    assert jnp.allclose(out, ref, atol=1e-4, rtol=1e-4), \
        float(jnp.max(jnp.abs(out - ref)))

    # 2) Longer rollout (T=257 -> B=256): batched grid path with 128-row tiles,
    #    VMEM-resident weights and lane-dense output stores.
    T2 = 257
    feature2 = jax.random.normal(k_feat2, (1, T2, FEATURE_DIM), jnp.float32)
    action2 = jax.random.normal(k_act2, (T2, ACTION_DIM), jnp.float32)
    out2 = jax.block_until_ready(
        feature_auxiliary_forward(feature2, action2, params,
                                  row_tile=128, gridless_max_rows=64))
    ref2 = reference(feature2, action2)
    assert out2.shape == (T2 - 1, OUTPUT_DIM)
    assert jnp.allclose(out2, ref2, atol=1e-4, rtol=1e-4), \
        float(jnp.max(jnp.abs(out2 - ref2)))

    print("KERNEL_OK")
</pallas_src>

<mosaic_0001>
module attributes {stable_mosaic.version = 11 : i64} {
  func.func @_feature_aux_kernel(%arg0: memref<1x9x24xf32, #tpu.memory_space<vmem>>, %arg1: memref<9x8xf32, #tpu.memory_space<vmem>>, %arg2: memref<33x64xf32, #tpu.memory_space<vmem>>, %arg3: memref<65x128xf32, #tpu.memory_space<vmem>>, %arg4: memref<8x128xf32, #tpu.memory_space<vmem>>) attributes {dimension_semantics = [], scalar_prefetch = 0 : i64, scratch_operands = 0 : i64, tpu.core_type = #tpu.core_type<tc>} {
    %c0 = arith.constant 0 : index
    %c0_0 = arith.constant 0 : index
    %c0_1 = arith.constant 0 : index
    %0 = vector.load %arg0[%c0, %c0_0, %c0_1] : memref<1x9x24xf32, #tpu.memory_space<vmem>>, vector<1x8x24xf32>
    %1 = vector.shape_cast %0 : vector<1x8x24xf32> to vector<8x24xf32>
    %c0_2 = arith.constant 0 : index
    %c0_3 = arith.constant 0 : index
    %2 = vector.load %arg1[%c0_2, %c0_3] : memref<9x8xf32, #tpu.memory_space<vmem>>, vector<8x8xf32>
    %c0_4 = arith.constant 0 : index
    %c0_5 = arith.constant 0 : index
    %3 = vector.load %arg2[%c0_4, %c0_5] : memref<33x64xf32, #tpu.memory_space<vmem>>, vector<24x64xf32>
    %c24 = arith.constant 24 : index
    %c0_6 = arith.constant 0 : index
    %4 = vector.load %arg2[%c24, %c0_6] : memref<33x64xf32, #tpu.memory_space<vmem>>, vector<8x64xf32>
    %c32 = arith.constant 32 : index
    %c0_7 = arith.constant 0 : index
    %5 = vector.load %arg2[%c32, %c0_7] : memref<33x64xf32, #tpu.memory_space<vmem>>, vector<1x64xf32>
    %cst = arith.constant dense<0.000000e+00> : vector<8x64xf32>
    %6 = tpu.matmul %1, %3, %cst {dimension_numbers = #tpu.dot_dimension_numbers<[1], [0], [0], [1], [0, 0, 1, 1], [], []>} : vector<8x24xf32>, vector<24x64xf32>, vector<8x64xf32> -> vector<8x64xf32>
    %cst_8 = arith.constant dense<0.000000e+00> : vector<8x64xf32>
    %7 = tpu.matmul %2, %4, %cst_8 {dimension_numbers = #tpu.dot_dimension_numbers<[1], [0], [0], [1], [0, 0, 1, 1], [], []>} : vector<8x8xf32>, vector<8x64xf32>, vector<8x64xf32> -> vector<8x64xf32>
    %8 = arith.addf %6, %7 : vector<8x64xf32>
    %9 = vector.broadcast %5 : vector<1x64xf32> to vector<8x64xf32>
    %10 = arith.addf %8, %9 : vector<8x64xf32>
    %cst_9 = arith.constant 0.000000e+00 : f32
    %11 = vector.broadcast %cst_9 : f32 to vector<8x64xf32>
    %12 = arith.maximumf %10, %11 : vector<8x64xf32>
    %c0_10 = arith.constant 0 : index
    %c0_11 = arith.constant 0 : index
    %13 = vector.load %arg3[%c0_10, %c0_11] : memref<65x128xf32, #tpu.memory_space<vmem>>, vector<64x128xf32>
    %c64 = arith.constant 64 : index
    %c0_12 = arith.constant 0 : index
    %14 = vector.load %arg3[%c64, %c0_12] : memref<65x128xf32, #tpu.memory_space<vmem>>, vector<1x128xf32>
    %cst_13 = arith.constant dense<0.000000e+00> : vector<8x128xf32>
    %15 = tpu.matmul %12, %13, %cst_13 {dimension_numbers = #tpu.dot_dimension_numbers<[1], [0], [0], [1], [0, 0, 1, 1], [], []>} : vector<8x64xf32>, vector<64x128xf32>, vector<8x128xf32> -> vector<8x128xf32>
    %16 = vector.broadcast %14 : vector<1x128xf32> to vector<8x128xf32>
    %17 = arith.addf %15, %16 : vector<8x128xf32>
    %c0_14 = arith.constant 0 : index
    %c0_15 = arith.constant 0 : index
    %18 = vector.load %arg4[%c0_14, %c0_15] : memref<8x128xf32, #tpu.memory_space<vmem>>, vector<8x128xf32>
    tpu.vector_store %arg4[%c0_14, %c0_15], %17 {strides = array<i32>} : memref<8x128xf32, #tpu.memory_space<vmem>>, vector<8x128xf32>,
    return
  }
}

</mosaic_0001>

<bundles_post_ra>
// kernel: tpu_custom_call.1
= control target key start
LH: loop header
LB: loop body
LE: loop exit
PB: predicated region body
PF: predicated region fallthrough
CT: control target
= control target key end

     0   :  { %9 = vsyncpa [#allocation3], 0  ;;  %s261_s0 = inlined_call_operand.vmem [shape: f32[1,9,24], index: 0, kind: input, shape index: {}]   ;;  %s262_s1 = inlined_call_operand.vmem [shape: f32[9,8], index: 1, kind: input, shape index: {}]   ;;  %s263_s2 = inlined_call_operand.vmem [shape: f32[33,64], index: 2, kind: input, shape index: {}]   ;;  %s264_s3 = inlined_call_operand.hbm [shape: f32[65,128], index: 3, kind: input, shape index: {}]   ;;  %s265_s4 = inlined_call_operand.hbm [shape: f32[8,128], index: 4, kind: output, shape index: {}]  }
   0x1   :  { %10 = vsyncpa [#allocation4], 0  ;;  %s21_s17 = sshll.u32 %s264_s3, 4  ;;  %s205_s18 = smov [#allocation2]   ;;  %s22_s17 = int_to_ptr.hbm [resolvable:$true] %s21_s17 }
   0x2   :  { %s23_s19 = sshll.u32 %s205_s18, 4  ;;  %s206_s20 = smov 128   ;;  %s24_s19 = int_to_ptr.vmem [resolvable:$true] %s23_s19 }
   0x3   :  { %s207_s21 = smov 8  }
   0x4   :  { %29 = dma.hbm_to_vmem [thread:$0]  %s22_s17, 1152, %s24_s19, [#allocation3], %s206_s20, %s206_s20, %s207_s21  }
   0x5   :  { %201 = dma.done.wait [#allocation3], 1152  }
   0x6   :  { %202 = vsyncadd [#allocation3], 4294966144  ;;  %vm41_vm0 = vcmask 64512   ;;  %v38_v0 = vld [vmem:[%s263_s2 + $0x10] sm:$0xff]  ;;  %v37_v1 = vld [vmem:[%s263_s2 + $0x8] sm:$0xff]  ;;  %vm65_vm1 = vcmask 195584  }
   0x7   :  { %v39_v2 = vld [vmem:[%s263_s2 + $0x18] sm:$0xff]  ;;  %82 = vmatpush.msra.mxu1 %v38_v0  ;;  %v35_v3 = vld [vmem:[%s262_s1] sm:$0xff]  ;;  %v98_v6 = vld [vmem:[#allocation2 + $0x30] sm:$0xff]  ;;  %vm102_vm2 = vcmask 523264   ;;  %s208_s7 = smov [#allocation5]   ;;  %s134_s11 = sshll.u32 %s265_s4, 4  ;;  %s135_s11 = int_to_ptr.hbm [resolvable:$true] %s134_s11 }
   0x8   :  { %60 = vmatpush.msra.mxu0 %v39_v2  ;;  %v36_v4 = vld [vmem:[%s263_s2] sm:$0xff]  ;;  %v99_v5 = vld [vmem:[#allocation2 + $0x38] sm:$0xff]  ;;  %v97_v8 = vld [vmem:[#allocation2 + $0x28] sm:$0xff]  ;;  %s132_s8 = sshll.u32 %s208_s7, 4  ;;  %s133_s8 = int_to_ptr.vmem [resolvable:$true] %s132_s8 }
   0x9   :  { %144 = vmatmul.msk.f32.vlgmr.msra.gmra.mxu0 %vm41_vm0, %v35_v3  ;;  %83 = vmatpush.msra.mxu1 %v37_v1  ;;  %v34_v7 = vld [vmem:[%s261_s0] sm:$0xff]  ;;  %v95_v10 = vld [vmem:[#allocation2 + $0x18] sm:$0xff]  ;;  %v94_v11 = vld [vmem:[#allocation2 + $0x10] sm:$0xff] }
   0xa   :  { %114 = vmatpush.msra.mxu2 %v99_v5  ;;  %v96_v9 = vld [vmem:[#allocation2 + $0x20] sm:$0xff]  ;;  %v93_v12 = vld [vmem:[#allocation2 + $0x8] sm:$0xff] }
   0xb   :  { %84 = vmatpush.msra.mxu1 %v36_v4  ;;  %v92_v13 = vld [vmem:[#allocation2] sm:$0xff] }
   0xc   :  { %115 = vmatpush.msra.mxu2 %v98_v6  ;;  %145 = vmatmul.msk.f32.vlgmr.msra.gmra.mxu1 %vm65_vm1, %v34_v7  ;;  %v151_v15 = vld [vmem:[%s263_s2 + $0x20] ss:$0 sm:$0xff] }
   0xd   :  { %v152_v20 = vld [vmem:[#allocation2 + $0x40] ss:$0 sm:$0xff] }
   0xe   :  { %116 = vmatpush.msra.mxu2 %v97_v8 }
  0x10   :  { %117 = vmatpush.msra.mxu2 %v96_v9 }
  0x12   :  { %118 = vmatpush.msra.mxu2 %v95_v10 }
  0x14   :  { %119 = vmatpush.msra.mxu2 %v94_v11 }
  0x16   :  { %120 = vmatpush.msra.mxu2 %v93_v12 }
  0x18   :  { %121 = vmatpush.msra.mxu2 %v92_v13 }
  0x86   :  { %v62_v14 = vpop.f32.mrf.mxu0 }
  0x89   :  { %v86_v16 = vpop.f32.mrf.mxu1 }
  0x8a   :  { %v87_v17 = vadd.f32 %v86_v16, %v62_v14 }
  0x8c   :  { %v90_v18 = vadd.f32 %v151_v15, %v87_v17 }
  0x8e   :  { %v91_v19 = vmax.f32 %v90_v18, 0.0 }
  0x90   :  { %146 = vmatmul.msk.f32.vlgmr.msra.gmra.mxu2 %vm102_vm2, %v91_v19 }
 0x113   :  { %v123_v21 = vpop.f32.mrf.mxu2 }
 0x114   :  { %v124_v22 = vadd.f32 %v152_v20, %v123_v21 }
 0x116   :  { %126 = vst [vmem:[#allocation5] sm:$0xff] %v124_v22 }
 0x117   :  { %137 = dma.vmem_to_hbm [thread:$0]  %s133_s8, 128, %s135_s11, [#allocation4]  }
 0x118   :  { %203 = dma.done.wait [#allocation4], 128  }
 0x119   :  { %204 = vsyncadd [#allocation4], 4294967168 }
 0x11a   :  { %142 = vsyncpa [#allocation3], 1 }
 0x11b   :  { %143 = vsyncpa [#allocation4], 1 }

</bundles_post_ra>
